<compile_context>
chip_gen: v6e
topology: v6e:2x2x1
jax: 0.10.0
libtpu: 0.0.40
codegen_flags: <defaults>
</compile_context>

<pallas_src>
import jax
import jax.numpy as jnp
from jax.experimental import pallas as pl
from jax.experimental.pallas import tpu as pltpu

LANE = 128             # vreg lane width
SUB = 8                # vreg sublane count
ALIGN = SUB * LANE     # 1024-element alignment for the kernel prefix


def _cdiv(a, b):
    return (a + b - 1) // b


def _chip_defaults():
    """Best-effort per-generation defaults (never raises)."""
    kind = ""
    try:
        kind = jax.devices()[0].device_kind.lower()
    except Exception:
        pass
    two_tensorcores = any(t in kind for t in ("v4", "v5p", "v7", "7x"))
    big_tiles = any(t in kind for t in ("v6", "v7", "7x"))
    max_tile_rows = 4096 if big_tiles else 2048
    return max_tile_rows, (2 if two_tensorcores else 1)


def _xsig(ey):
    # ey * (2*sigmoid(ey) - 1) == ey * tanh(ey / 2): one EUP transcendental.
    return ey * jnp.tanh(0.5 * ey)


def xsigmoid_loss(y_prime_t, y_t, *, max_tile_rows=None, num_shards=None):
    assert y_prime_t.shape == y_t.shape
    n_elem = int(y_prime_t.size)
    if n_elem == 0:
        return jnp.float32(0.0)

    d_tile_rows, d_shards = _chip_defaults()
    if max_tile_rows is None:
        max_tile_rows = d_tile_rows
    if num_shards is None:
        num_shards = d_shards
    max_tile_rows = max(SUB, (max_tile_rows // SUB) * SUB)

    yp = jnp.ravel(y_prime_t)          # native dtype, no astype pass in HBM
    yt = jnp.ravel(y_t)

    # (8*128)-aligned prefix streams through the kernel; the tiny tail
    # (< 1024 elements) is summed with plain jnp - no full-array pad pass.
    aligned = (n_elem // ALIGN) * ALIGN
    total = jnp.float32(0.0)

    if aligned:
        rows = aligned // LANE                    # multiple of 8
        tile_rows = min(max_tile_rows, rows)      # multiple of 8
        n_tiles = _cdiv(rows, tile_rows)
        shards = num_shards if n_tiles >= num_shards else 1
        tps = _cdiv(n_tiles, shards)              # tiles per shard

        has_partial = (rows % tile_rows) != 0     # last real tile is ragged
        has_overflow = (shards * tps) != n_tiles  # some (s,i) map past the end

        yp2 = yp[:aligned].reshape(rows, LANE)
        yt2 = yt[:aligned].reshape(rows, LANE)

        def kernel(yp_ref, yt_ref, out_ref):
            i = pl.program_id(1)

            # Resident per-shard accumulator across the "arbitrary" axis.
            @pl.when(i == 0)
            def _init():
                out_ref[...] = jnp.zeros_like(out_ref)

            tile = pl.program_id(0) * tps + i

            def body(masked):
                # Upcast per block inside the kernel (free for f32 inputs,
                # halves streamed bytes for bf16 vs. a wrapper astype).
                ey = (yt_ref[...].astype(jnp.float32)
                      - yp_ref[...].astype(jnp.float32))
                if masked:
                    base_row = tile * tile_rows
                    row_ids = jax.lax.broadcasted_iota(
                        jnp.int32, (tile_rows, LANE), 0)
                    # select (not multiply) so garbage NaN/Inf rows of the
                    # ragged edge block are discarded, not propagated.
                    ey = jnp.where(row_ids < (rows - base_row), ey, 0.0)
                val = _xsig(ey)
                # Fold the tile down to one (8,128) slab with plain VPU adds.
                out_ref[...] += val.reshape(
                    tile_rows // SUB, SUB, LANE).sum(axis=0)

            if not has_partial and not has_overflow:
                body(False)                       # mask-free hot path
            elif not has_partial:
                @pl.when(tile < n_tiles)          # skip overflow iterations
                def _():
                    body(False)
            else:
                @pl.when(tile < n_tiles - 1)      # interior tiles: no mask
                def _interior():
                    body(False)

                @pl.when(tile == n_tiles - 1)     # only the last tile masks
                def _last():
                    body(True)
                # tile >= n_tiles (overflow): body skipped entirely.

        if has_overflow:
            # Clamp so overflow iterations re-read a valid block (their
            # contribution is skipped in the kernel via pl.when).
            def in_map(s, i):
                return (jnp.minimum(s * tps + i, n_tiles - 1), 0)
        else:
            def in_map(s, i):
                return (s * tps + i, 0)

        # Raise the scoped-VMEM limit only when the chosen tile needs it
        # (2 inputs x 2 pipeline buffers + f32 elementwise temps + headroom).
        itemsize = max(yp.dtype.itemsize, yt.dtype.itemsize)
        in_block_bytes = tile_rows * LANE * itemsize
        f32_tile_bytes = tile_rows * LANE * 4
        vmem_needed = 4 * in_block_bytes + 4 * f32_tile_bytes + (2 << 20)
        vmem_limit = (min(vmem_needed, 40 << 20)
                      if vmem_needed > (16 << 20) else None)

        cost = pl.CostEstimate(
            flops=5 * aligned,
            transcendentals=aligned,
            bytes_accessed=aligned * (yp.dtype.itemsize + yt.dtype.itemsize)
            + shards * SUB * LANE * 4,
        )

        partials = pl.pallas_call(
            kernel,
            out_shape=jax.ShapeDtypeStruct((shards * SUB, LANE), jnp.float32),
            grid_spec=pltpu.PrefetchScalarGridSpec(
                num_scalar_prefetch=0,
                grid=(shards, tps),
                in_specs=[
                    pl.BlockSpec((tile_rows, LANE), in_map),
                    pl.BlockSpec((tile_rows, LANE), in_map),
                ],
                out_specs=pl.BlockSpec((SUB, LANE), lambda s, i: (s, 0)),
            ),
            compiler_params=pltpu.CompilerParams(
                dimension_semantics=("parallel", "arbitrary"),
                vmem_limit_bytes=vmem_limit),
            cost_estimate=cost,
        )(yp2, yt2)

        total = total + jnp.sum(partials)

    if aligned < n_elem:
        # Tail (< 1024 elements): plain jnp, negligible cost, avoids padding
        # both full arrays in HBM.
        ey_tail = (yt[aligned:].astype(jnp.float32)
                   - yp[aligned:].astype(jnp.float32))
        total = total + jnp.sum(_xsig(ey_tail))

    return total / jnp.float32(n_elem)


def _reference(y_prime_t, y_t):
    ey = y_t.astype(jnp.float32) - y_prime_t.astype(jnp.float32)
    return jnp.mean(ey * (2.0 * jax.nn.sigmoid(ey) - 1.0))


if __name__ == "__main__":
    key = jax.random.PRNGKey(0)
    k1, k2, k3, k4, k5, k6, k7, k8 = jax.random.split(key, 8)

    # Primary case: NCHW (2, 4, 16, 16), f32 -> single unmasked tile.
    shape = (2, 4, 16, 16)
    y_prime_t = jax.random.normal(k1, shape, dtype=jnp.float32)
    y_t = jax.random.normal(k2, shape, dtype=jnp.float32)
    loss = xsigmoid_loss(y_prime_t, y_t)
    jax.block_until_ready(loss)
    ref = _reference(y_prime_t, y_t)
    assert jnp.allclose(loss, ref, atol=1e-5, rtol=1e-5), (loss, ref)

    # Non-(8*128)-aligned size -> exercises the plain-jnp tail path (no pad).
    a = jax.random.normal(k3, (3, 5, 7, 11), dtype=jnp.float32)
    b = jax.random.normal(k4, (3, 5, 7, 11), dtype=jnp.float32)
    out2 = xsigmoid_loss(a, b)
    jax.block_until_ready(out2)
    assert jnp.allclose(out2, _reference(a, b), atol=1e-5, rtol=1e-5)

    # Small tile + forced 2 shards -> exercises interior (unmasked) tiles,
    # the masked last partial tile, overflow-iteration skipping, and the
    # leading parallel axis.  5120 elems -> 40 rows, 3 tiles of 16 rows.
    c = jax.random.normal(k5, (2, 4, 16, 40), dtype=jnp.float32)
    d = jax.random.normal(k6, (2, 4, 16, 40), dtype=jnp.float32)
    out3 = xsigmoid_loss(c, d, max_tile_rows=16, num_shards=2)
    jax.block_until_ready(out3)
    assert jnp.allclose(out3, _reference(c, d), atol=1e-5, rtol=1e-5)

    # bf16 inputs -> native-dtype streaming with in-kernel upcast.
    e = jax.random.normal(k7, shape, dtype=jnp.bfloat16)
    f = jax.random.normal(k8, shape, dtype=jnp.bfloat16)
    out4 = xsigmoid_loss(e, f)
    jax.block_until_ready(out4)
    assert jnp.allclose(out4, _reference(e, f), atol=1e-4, rtol=1e-4)

    print("KERNEL_OK")
</pallas_src>

<mosaic_0001>
module attributes {stable_mosaic.version = 11 : i64} {
  func.func @kernel(%arg0: i32, %arg1: i32, %arg2: memref<16x128xf32, #tpu.memory_space<vmem>>, %arg3: memref<16x128xf32, #tpu.memory_space<vmem>>, %arg4: memref<8x128xf32, #tpu.memory_space<vmem>>) attributes {dimension_semantics = [#tpu.dimension_semantics<parallel>, #tpu.dimension_semantics<arbitrary>], iteration_bounds = array<i64: 1, 1>, scalar_prefetch = 0 : i64, scratch_operands = 0 : i64, tpu.core_type = #tpu.core_type<tc>, window_params = [{transform_indices = @transform_0, window_bounds = array<i64: 16, 128>}, {transform_indices = @transform_1, window_bounds = array<i64: 16, 128>}, {transform_indices = @transform_2, window_bounds = array<i64: 8, 128>}]} {
    %c0_i32 = arith.constant 0 : i32
    %0 = arith.cmpi eq, %arg1, %c0_i32 : i32
    %1 = arith.extui %0 : i1 to i32
    %c0_i32_0 = arith.constant 0 : i32
    %2 = arith.cmpi ne, %1, %c0_i32_0 : i32
    scf.if %2 {
      %cst_9 = arith.constant 0.000000e+00 : f32
      %15 = vector.broadcast %cst_9 : f32 to vector<8x128xf32>
      %c0_10 = arith.constant 0 : index
      %c0_11 = arith.constant 0 : index
      %16 = vector.load %arg4[%c0_10, %c0_11] : memref<8x128xf32, #tpu.memory_space<vmem>>, vector<8x128xf32>
      tpu.vector_store %arg4[%c0_10, %c0_11], %15 {strides = array<i32>} : memref<8x128xf32, #tpu.memory_space<vmem>>, vector<8x128xf32>,
    } else {
    }
    %c0 = arith.constant 0 : index
    %c0_1 = arith.constant 0 : index
    %3 = vector.load %arg3[%c0, %c0_1] : memref<16x128xf32, #tpu.memory_space<vmem>>, vector<16x128xf32>
    %c0_2 = arith.constant 0 : index
    %c0_3 = arith.constant 0 : index
    %4 = vector.load %arg2[%c0_2, %c0_3] : memref<16x128xf32, #tpu.memory_space<vmem>>, vector<16x128xf32>
    %5 = arith.subf %3, %4 : vector<16x128xf32>
    %cst = arith.constant 5.000000e-01 : f32
    %6 = vector.broadcast %cst : f32 to vector<16x128xf32>
    %7 = arith.mulf %6, %5 : vector<16x128xf32>
    %8 = math.tanh %7 : vector<16x128xf32>
    %9 = arith.mulf %5, %8 : vector<16x128xf32>
    %c0_4 = arith.constant 0 : index
    %c0_5 = arith.constant 0 : index
    %10 = vector.load %arg4[%c0_4, %c0_5] : memref<8x128xf32, #tpu.memory_space<vmem>>, vector<8x128xf32>
    %11 = vector.shape_cast %9 : vector<16x128xf32> to vector<2x8x128xf32>
    %cst_6 = arith.constant dense<0.000000e+00> : vector<8x128xf32>
    %12 = vector.multi_reduction <add>, %11, %cst_6 [0] : vector<2x8x128xf32> to vector<8x128xf32>
    %13 = arith.addf %10, %12 : vector<8x128xf32>
    %c0_7 = arith.constant 0 : index
    %c0_8 = arith.constant 0 : index
    %14 = vector.load %arg4[%c0_7, %c0_8] : memref<8x128xf32, #tpu.memory_space<vmem>>, vector<8x128xf32>
    tpu.vector_store %arg4[%c0_7, %c0_8], %13 {strides = array<i32>} : memref<8x128xf32, #tpu.memory_space<vmem>>, vector<8x128xf32>,
    return
  }
  func.func @transform_0(%arg0: i32, %arg1: i32) -> (i32, i32) {
    %c1_i32 = arith.constant 1 : i32
    %0 = arith.muli %arg0, %c1_i32 : i32
    %1 = arith.addi %0, %arg1 : i32
    %c0_i32 = arith.constant 0 : i32
    %c0_i32_0 = arith.constant 0 : i32
    return %1, %c0_i32 : i32, i32
  }
  func.func @transform_1(%arg0: i32, %arg1: i32) -> (i32, i32) {
    %c1_i32 = arith.constant 1 : i32
    %0 = arith.muli %arg0, %c1_i32 : i32
    %1 = arith.addi %0, %arg1 : i32
    %c0_i32 = arith.constant 0 : i32
    %c0_i32_0 = arith.constant 0 : i32
    return %1, %c0_i32 : i32, i32
  }
  func.func @transform_2(%arg0: i32, %arg1: i32) -> (i32, i32) {
    %c0_i32 = arith.constant 0 : i32
    %c0_i32_0 = arith.constant 0 : i32
    return %arg0, %c0_i32 : i32, i32
  }
}

</mosaic_0001>

<bundles_post_ra>
// kernel: tpu_custom_call.1
= control target key start
LH: loop header
LB: loop body
LE: loop exit
PB: predicated region body
PF: predicated region fallthrough
CT: control target
= control target key end

     0   :  { %7 = vsyncpa [#allocation3], 0  ;;  %s194_s0 = inlined_call_operand.hbm [shape: f32[16,128], index: 0, kind: input, shape index: {}]   ;;  %s195_s1 = inlined_call_operand.hbm [shape: f32[16,128], index: 1, kind: input, shape index: {}]   ;;  %s196_s2 = inlined_call_operand.hbm [shape: f32[8,128], index: 2, kind: output, shape index: {}]  }
   0x1   :  { %8 = vsyncpa [#allocation6], 0 }
   0x2   :  { %9 = vsyncpa [#allocation4], 0  ;;  %s165_s9 = smov [#allocation2]  }
   0x3   :  { %s19_s10 = sshll.u32 %s165_s9, 4  ;;  %s20_s10 = int_to_ptr.vmem [resolvable:$true] %s19_s10 }
   0x4   :  { %s107_s11 = scalar_lea.vmem %s20_s10, 256  ;;  %p112_p1 = scmp.lt.s32.totalorder %s20_s10, %s20_s10 }
   0x5   :  { %p108_p0 = scmp.ne.s32.totalorder %s20_s10, %s107_s11  ;;  %p113_p2 = scmp.lt.s32.totalorder %s107_s11, %s107_s11 }
   0x7   :  { %p114_p3 = por %p113_p2, %p112_p1 }
   0x9   :  { %p115_p4 = pnand %p114_p3, %p108_p0 }
   0xb   :  { %118 = shalt.err (!%p115_p4)
}
   0xc   :  { %s166_s12 = smov 128   ;;  %s167_s13 = smov 8  }
   0xd   :  { %25 = dma.hbm_to_vmem [thread:$0]  %s194_s0, 256, %s20_s10, [#allocation3], %s166_s12, %s166_s12, %s167_s13  }
   0xe   :  { %s168_s16 = smov [#allocation5]  }
   0xf   :  { %s35_s17 = sshll.u32 %s168_s16, 4  ;;  %s36_s17 = int_to_ptr.vmem [resolvable:$true] %s35_s17 }
  0x10   :  { %s127_s18 = scalar_lea.vmem %s36_s17, 256  ;;  %p132_p6 = scmp.lt.s32.totalorder %s36_s17, %s36_s17 }
  0x11   :  { %p128_p5 = scmp.ne.s32.totalorder %s36_s17, %s127_s18  ;;  %p133_p7 = scmp.lt.s32.totalorder %s127_s18, %s127_s18 }
  0x13   :  { %p134_p8 = por %p133_p7, %p132_p6 }
  0x15   :  { %p135_p9 = pnand %p134_p8, %p128_p5 }
  0x17   :  { %138 = shalt.err (!%p135_p9)
}
  0x18   :  { %41 = dma.hbm_to_vmem [thread:$0]  %s195_s1, 256, %s36_s17, [#allocation6], %s166_s12, %s166_s12, %s167_s13  }
  0x19   :  { %159 = dma.done.wait [#allocation3], 256  }
  0x1a   :  { %160 = vsyncadd [#allocation3], 4294967040 }
  0x1b   :  { %161 = dma.done.wait [#allocation6], 256  }
  0x1c   :  { %162 = vsyncadd [#allocation6], 4294967040  ;;  %v57_v0 = vld [vmem:[#allocation5] sm:$0xff]  ;;  %v58_v1 = vld [vmem:[#allocation5 + $0x8] sm:$0xff]  ;;  %s169_s0 = smov [#allocation7]  }
  0x1d   :  { %v59_v2 = vld [vmem:[#allocation2] sm:$0xff]  ;;  %v60_v3 = vld [vmem:[#allocation2 + $0x8] sm:$0xff]  ;;  %s79_s1 = sshll.u32 %s169_s0, 4  ;;  %s80_s1 = int_to_ptr.vmem [resolvable:$true] %s79_s1 }
  0x1e   :  { %v61_v4 = vsub.f32 %v57_v0, %v59_v2  ;;  %v62_v5 = vsub.f32 %v58_v1, %v60_v3  ;;  %s139_s21 = scalar_lea.vmem %s80_s1, 128  ;;  %p144_p11 = scmp.lt.s32.totalorder %s80_s1, %s80_s1 }
  0x1f   :  { %p140_p10 = scmp.ne.s32.totalorder %s80_s1, %s139_s21  ;;  %p145_p12 = scmp.lt.s32.totalorder %s139_s21, %s139_s21 }
  0x20   :  { %v63_v6 = vmul.f32 0.5, %v61_v4  ;;  %v64_v7 = vmul.f32 0.5, %v62_v5 }
  0x21   :  { %p146_p13 = por %p145_p12, %p144_p11 }
  0x22   :  { %95 = vtanh.f32 %v63_v6 }
  0x23   :  { %97 = vtanh.f32 %v64_v7  ;;  %p147_p0 = pnand %p146_p13, %p140_p10 }
  0x2f   :  { %v96_v8 = vpop.eup %95 }
  0x30   :  { %v98_v9 = vpop.eup %97  ;;  %v67_v10 = vmul.f32 %v96_v8, %v61_v4 }
  0x31   :  { %v68_v11 = vmul.f32 %v98_v9, %v62_v5 }
  0x33   :  { %v70_v12 = vadd.f32 %v68_v11, %v67_v10 }
  0x35   :  { %72 = vst [vmem:[#allocation7] sm:$0xff] %v70_v12 }
  0x36   :  { %150 = shalt.err (!%p147_p0)
}
  0x37   :  { %82 = dma.vmem_to_hbm [thread:$0]  %s80_s1, 128, %s196_s2, [#allocation4]  }
  0x38   :  { %163 = dma.done.wait [#allocation4], 128  }
  0x39   :  { %164 = vsyncadd [#allocation4], 4294967168 }
  0x3a   :  { %86 = vsyncpa [#allocation3], 1 }
  0x3b   :  { %87 = vsyncpa [#allocation6], 1 }
  0x3c   :  { %88 = vsyncpa [#allocation4], 1 }

</bundles_post_ra>
